<compile_context>
chip_gen: v7x
topology: tpu7x:2x2x1
jax: 0.10.0
libtpu: 0.0.40
codegen_flags: <defaults>
</compile_context>

<pallas_src>
import jax
import jax.numpy as jnp
from jax.experimental import pallas as pl
from jax.experimental.pallas import tpu as pltpu


def _graph_prediction_kernel(a_ref, x_ref, w1_ref, b1_ref, pa_ref,
                             w2_ref, b2_ref, wh_ref, bh_ref, o_ref, acc_ref):
    """Row-tiled fused forward.

    Per grid step i (one row tile of A_hat):
      H1_tile = relu(A_tile @ X @ W1 + b1)        (TM, H)
      acc    += PA[:, tile] @ H1_tile             (B, H)    # pool folded into layer 2
    Last step:
      pooled  = acc @ W2 + b2                     (B, H)    # exact: pool rows sum to 1
      out     = pooled @ Wh_pad + bh_pad          (B, Cpad) # Dropout is eval-mode identity
    """
    i = pl.program_id(0)

    @pl.when(i == 0)
    def _():
        acc_ref[...] = jnp.zeros_like(acc_ref)

    # GCN layer 1 on this row tile (bf16 inputs -> native MXU path, f32 accumulation).
    ax = jnp.dot(a_ref[...], x_ref[...], preferred_element_type=jnp.float32)
    h1 = jnp.dot(ax, w1_ref[...], preferred_element_type=jnp.float32) + b1_ref[...]
    h1 = jnp.maximum(h1, 0.0)

    # Mean-pool pushed through layer-2 aggregation: replaces the NxN @ NxH matmul
    # with a BxN @ NxH one (PA = pool @ A_hat, precomputed in the wrapper).
    acc_ref[...] += jnp.dot(pa_ref[...], h1, preferred_element_type=jnp.float32)

    @pl.when(i == pl.num_programs(0) - 1)
    def _():
        # Layer-2 linear + bias, then the head Linear.
        # TODO(synk): training-mode dropout (pltpu.prng_seed + prng_random_bits mask)
        #             not emitted; eval-mode (identity) semantics only.
        pooled = jnp.dot(acc_ref[...], w2_ref[...],
                         preferred_element_type=jnp.float32) + b2_ref[...]
        o_ref[...] = jnp.dot(pooled, wh_ref[...],
                             preferred_element_type=jnp.float32) + bh_ref[...]


def graph_prediction_forward(x, edge_index, batch_idx, params, num_graphs, *, tm=128):
    """JAX wrapper: dense A_hat / pooling matrices + row-tiled Pallas kernel."""
    f32, bf16 = jnp.float32, jnp.bfloat16
    n, f_in = x.shape

    # Dense adjacency with self loops + symmetric normalization (GCNConv semantics).
    adj = jnp.zeros((n, n), f32).at[edge_index[0], edge_index[1]].set(1.0)
    adj = jnp.maximum(adj, jnp.eye(n, dtype=f32))
    deg = jnp.sum(adj, axis=1)
    d_inv_sqrt = jax.lax.rsqrt(jnp.maximum(deg, 1e-12))
    a_hat = d_inv_sqrt[:, None] * adj * d_inv_sqrt[None, :]

    # global_mean_pool as a (B, N) matrix, then fold it through layer-2 aggregation.
    one_hot = (batch_idx[None, :] == jnp.arange(num_graphs)[:, None]).astype(f32)
    counts = jnp.sum(one_hot, axis=1, keepdims=True)
    pool = one_hot / jnp.maximum(counts, 1.0)
    pa = pool @ a_hat                                  # (B, N), kept in f32 (tiny)

    w1, b1, w2, b2, wh, bh = params
    h = w1.shape[1]
    c_out = wh.shape[1]

    # Pad node dim to a multiple of the row tile (zero rows/cols are exact no-ops:
    # padded H1 rows are hit only by zero PA columns).
    n_pad = ((n + tm - 1) // tm) * tm
    if n_pad != n:
        a_hat = jnp.pad(a_hat, ((0, n_pad - n), (0, n_pad - n)))
        pa = jnp.pad(pa, ((0, 0), (0, n_pad - n)))
        x = jnp.pad(x, ((0, n_pad - n), (0, 0)))

    # Pad head output channels to a lane-dense multiple of 128 (sliced off below).
    c_pad = ((c_out + 127) // 128) * 128
    wh_p = jnp.pad(wh.astype(f32), ((0, 0), (0, c_pad - c_out)))
    bh_p = jnp.pad(bh.astype(f32), ((0, 0), (0, c_pad - c_out)))

    grid = (n_pad // tm,)

    out = pl.pallas_call(
        _graph_prediction_kernel,
        out_shape=jax.ShapeDtypeStruct((num_graphs, c_pad), f32),
        grid_spec=pltpu.PrefetchScalarGridSpec(
            num_scalar_prefetch=0,
            grid=grid,
            in_specs=[
                pl.BlockSpec((tm, n_pad), lambda i: (i, 0)),        # A_hat row tile (bf16)
                pl.BlockSpec((n_pad, f_in), lambda i: (0, 0)),      # X, resident (bf16)
                pl.BlockSpec(w1.shape, lambda i: (0, 0)),           # W1
                pl.BlockSpec(b1.shape, lambda i: (0, 0)),           # b1
                pl.BlockSpec((num_graphs, tm), lambda i: (0, i)),   # PA column tile (f32)
                pl.BlockSpec(w2.shape, lambda i: (0, 0)),           # W2
                pl.BlockSpec(b2.shape, lambda i: (0, 0)),           # b2
                pl.BlockSpec(wh_p.shape, lambda i: (0, 0)),         # Wh (lane-padded)
                pl.BlockSpec(bh_p.shape, lambda i: (0, 0)),         # bh (lane-padded)
            ],
            out_specs=pl.BlockSpec((num_graphs, c_pad), lambda i: (0, 0)),
            scratch_shapes=[pltpu.VMEM((num_graphs, h), jnp.float32)],
        ),
        compiler_params=pltpu.CompilerParams(
            # Row axis carries the accumulator + fused finalize => reduction axis.
            dimension_semantics=("arbitrary",),
            vmem_limit_bytes=32 * 1024 * 1024,
        ),
    )(
        a_hat.astype(bf16),
        x.astype(bf16),
        w1.astype(f32), b1.astype(f32),
        pa.astype(f32),
        w2.astype(f32), b2.astype(f32),
        wh_p, bh_p,
    )
    return out[:, :c_out]


def _reference_forward(x, edge_index, batch_idx, params, num_graphs):
    """Pure-jnp f32 reference of the module semantics."""
    n = x.shape[0]
    adj = jnp.zeros((n, n), jnp.float32).at[edge_index[0], edge_index[1]].set(1.0)
    adj = jnp.maximum(adj, jnp.eye(n, dtype=jnp.float32))
    deg = jnp.sum(adj, axis=1)
    dinv = jax.lax.rsqrt(jnp.maximum(deg, 1e-12))
    a_hat = dinv[:, None] * adj * dinv[None, :]
    w1, b1, w2, b2, wh, bh = params
    h1 = jnp.maximum(a_hat @ x @ w1 + b1, 0.0)
    h2 = a_hat @ h1 @ w2 + b2
    one_hot = (batch_idx[None, :] == jnp.arange(num_graphs)[:, None]).astype(jnp.float32)
    pool = one_hot / jnp.maximum(one_hot.sum(1, keepdims=True), 1.0)
    pooled = pool @ h2
    return pooled @ wh + bh


if __name__ == "__main__":
    # 256 nodes split into 4 graphs of 64 nodes, 16 input features,
    # hidden = gnn-out = 32 channels, c_out = 3 graph classes.
    N, C_IN, C_HIDDEN, C_OUT_GNN, C_OUT, B = 256, 16, 32, 32, 3, 4

    key = jax.random.PRNGKey(0)
    kx, k1, k2, k3 = jax.random.split(key, 4)

    # Node features.
    x = jax.random.normal(kx, (N, C_IN), dtype=jnp.float32)

    # Undirected ring within each graph (both edge directions listed, PyG style).
    src, dst = [], []
    nodes_per_graph = N // B
    for g in range(B):
        for i in range(nodes_per_graph):
            a = g * nodes_per_graph + i
            b = g * nodes_per_graph + (i + 1) % nodes_per_graph
            src += [a, b]
            dst += [b, a]
    edge_index = jnp.array([src, dst], dtype=jnp.int32)

    # Nodes 0..63 -> graph 0, 64..127 -> graph 1, etc.
    batch_idx = jnp.repeat(jnp.arange(B, dtype=jnp.int32), nodes_per_graph)

    # Deterministic parameter init (Glorot-ish scaling).
    def glorot(k, shape):
        fan_in, fan_out = shape
        lim = (6.0 / (fan_in + fan_out)) ** 0.5
        return jax.random.uniform(k, shape, jnp.float32, -lim, lim)

    params = (
        glorot(k1, (C_IN, C_HIDDEN)), jnp.zeros((1, C_HIDDEN), jnp.float32),
        glorot(k2, (C_HIDDEN, C_OUT_GNN)), jnp.zeros((1, C_OUT_GNN), jnp.float32),
        glorot(k3, (C_OUT_GNN, C_OUT)), jnp.zeros((1, C_OUT), jnp.float32),
    )

    out = graph_prediction_forward(x, edge_index, batch_idx, params, B)
    out = jax.block_until_ready(out)

    ref = _reference_forward(x, edge_index, batch_idx, params, B)
    assert out.shape == (B, C_OUT)
    # Tolerance covers the bf16 cast of A_hat / X (f32 accumulation keeps it small).
    assert jnp.allclose(out, ref, atol=2e-2, rtol=2e-2), (out, ref)

    print("KERNEL_OK")
</pallas_src>

<mosaic_0001>
module attributes {stable_mosaic.version = 11 : i64} {
  func.func @_graph_prediction_kernel(%arg0: i32, %arg1: memref<128x256xbf16, #tpu.memory_space<vmem>>, %arg2: memref<256x16xbf16, #tpu.memory_space<vmem>>, %arg3: memref<16x32xf32, #tpu.memory_space<vmem>>, %arg4: memref<1x32xf32, #tpu.memory_space<vmem>>, %arg5: memref<4x128xf32, #tpu.memory_space<vmem>>, %arg6: memref<32x32xf32, #tpu.memory_space<vmem>>, %arg7: memref<1x32xf32, #tpu.memory_space<vmem>>, %arg8: memref<32x128xf32, #tpu.memory_space<vmem>>, %arg9: memref<1x128xf32, #tpu.memory_space<vmem>>, %arg10: memref<4x128xf32, #tpu.memory_space<vmem>>, %arg11: memref<4x32xf32, #tpu.memory_space<vmem>>) attributes {dimension_semantics = [#tpu.dimension_semantics<arbitrary>], iteration_bounds = array<i64: 2>, scalar_prefetch = 0 : i64, scratch_operands = 1 : i64, tpu.core_type = #tpu.core_type<tc>, window_params = [{transform_indices = @transform_0, window_bounds = array<i64: 128, 256>}, {pipeline_mode = #tpu.pipeline_mode<synchronous>, transform_indices = @transform_1, window_bounds = array<i64: 256, 16>}, {pipeline_mode = #tpu.pipeline_mode<synchronous>, transform_indices = @transform_2, window_bounds = array<i64: 16, 32>}, {pipeline_mode = #tpu.pipeline_mode<synchronous>, transform_indices = @transform_3, window_bounds = array<i64: 1, 32>}, {transform_indices = @transform_4, window_bounds = array<i64: 4, 128>}, {pipeline_mode = #tpu.pipeline_mode<synchronous>, transform_indices = @transform_5, window_bounds = array<i64: 32, 32>}, {pipeline_mode = #tpu.pipeline_mode<synchronous>, transform_indices = @transform_6, window_bounds = array<i64: 1, 32>}, {pipeline_mode = #tpu.pipeline_mode<synchronous>, transform_indices = @transform_7, window_bounds = array<i64: 32, 128>}, {pipeline_mode = #tpu.pipeline_mode<synchronous>, transform_indices = @transform_8, window_bounds = array<i64: 1, 128>}, {pipeline_mode = #tpu.pipeline_mode<synchronous>, transform_indices = @transform_9, window_bounds = array<i64: 4, 128>}]} {
    %c0_i32 = arith.constant 0 : i32
    %0 = arith.cmpi eq, %arg0, %c0_i32 : i32
    %1 = arith.extui %0 : i1 to i32
    %c0_i32_0 = arith.constant 0 : i32
    %2 = arith.cmpi ne, %1, %c0_i32_0 : i32
    scf.if %2 {
      %cst_18 = arith.constant 0.000000e+00 : f32
      %21 = vector.broadcast %cst_18 : f32 to vector<4x32xf32>
      %c0_19 = arith.constant 0 : index
      %c0_20 = arith.constant 0 : index
      %22 = vector.load %arg11[%c0_19, %c0_20] : memref<4x32xf32, #tpu.memory_space<vmem>>, vector<4x32xf32>
      tpu.vector_store %arg11[%c0_19, %c0_20], %21 {strides = array<i32>} : memref<4x32xf32, #tpu.memory_space<vmem>>, vector<4x32xf32>,
    } else {
    }
    %c0 = arith.constant 0 : index
    %c0_1 = arith.constant 0 : index
    %3 = vector.load %arg1[%c0, %c0_1] : memref<128x256xbf16, #tpu.memory_space<vmem>>, vector<128x256xbf16>
    %c0_2 = arith.constant 0 : index
    %c0_3 = arith.constant 0 : index
    %4 = vector.load %arg2[%c0_2, %c0_3] : memref<256x16xbf16, #tpu.memory_space<vmem>>, vector<256x16xbf16>
    %cst = arith.constant dense<0.000000e+00> : vector<128x16xf32>
    %5 = tpu.matmul %3, %4, %cst {dimension_numbers = #tpu.dot_dimension_numbers<[1], [0], [0], [1], [0, 0, 1, 1], [], []>} : vector<128x256xbf16>, vector<256x16xbf16>, vector<128x16xf32> -> vector<128x16xf32>
    %c0_4 = arith.constant 0 : index
    %c0_5 = arith.constant 0 : index
    %6 = vector.load %arg3[%c0_4, %c0_5] : memref<16x32xf32, #tpu.memory_space<vmem>>, vector<16x32xf32>
    %cst_6 = arith.constant dense<0.000000e+00> : vector<128x32xf32>
    %7 = tpu.matmul %5, %6, %cst_6 {dimension_numbers = #tpu.dot_dimension_numbers<[1], [0], [0], [1], [0, 0, 1, 1], [], []>} : vector<128x16xf32>, vector<16x32xf32>, vector<128x32xf32> -> vector<128x32xf32>
    %c0_7 = arith.constant 0 : index
    %c0_8 = arith.constant 0 : index
    %8 = vector.load %arg4[%c0_7, %c0_8] : memref<1x32xf32, #tpu.memory_space<vmem>>, vector<1x32xf32>
    %9 = vector.broadcast %8 : vector<1x32xf32> to vector<128x32xf32>
    %10 = arith.addf %7, %9 : vector<128x32xf32>
    %cst_9 = arith.constant 0.000000e+00 : f32
    %11 = vector.broadcast %cst_9 : f32 to vector<128x32xf32>
    %12 = arith.maximumf %10, %11 : vector<128x32xf32>
    %c0_10 = arith.constant 0 : index
    %c0_11 = arith.constant 0 : index
    %13 = vector.load %arg11[%c0_10, %c0_11] : memref<4x32xf32, #tpu.memory_space<vmem>>, vector<4x32xf32>
    %c0_12 = arith.constant 0 : index
    %c0_13 = arith.constant 0 : index
    %14 = vector.load %arg5[%c0_12, %c0_13] : memref<4x128xf32, #tpu.memory_space<vmem>>, vector<4x128xf32>
    %cst_14 = arith.constant dense<0.000000e+00> : vector<4x32xf32>
    %15 = tpu.matmul %14, %12, %cst_14 {dimension_numbers = #tpu.dot_dimension_numbers<[1], [0], [0], [1], [0, 0, 1, 1], [], []>} : vector<4x128xf32>, vector<128x32xf32>, vector<4x32xf32> -> vector<4x32xf32>
    %16 = arith.addf %13, %15 : vector<4x32xf32>
    %c0_15 = arith.constant 0 : index
    %c0_16 = arith.constant 0 : index
    %17 = vector.load %arg11[%c0_15, %c0_16] : memref<4x32xf32, #tpu.memory_space<vmem>>, vector<4x32xf32>
    tpu.vector_store %arg11[%c0_15, %c0_16], %16 {strides = array<i32>} : memref<4x32xf32, #tpu.memory_space<vmem>>, vector<4x32xf32>,
    %c1_i32 = arith.constant 1 : i32
    %18 = arith.cmpi eq, %arg0, %c1_i32 : i32
    %19 = arith.extui %18 : i1 to i32
    %c0_i32_17 = arith.constant 0 : i32
    %20 = arith.cmpi ne, %19, %c0_i32_17 : i32
    scf.if %20 {
      %c0_18 = arith.constant 0 : index
      %c0_19 = arith.constant 0 : index
      %21 = vector.load %arg11[%c0_18, %c0_19] : memref<4x32xf32, #tpu.memory_space<vmem>>, vector<4x32xf32>
      %c0_20 = arith.constant 0 : index
      %c0_21 = arith.constant 0 : index
      %22 = vector.load %arg6[%c0_20, %c0_21] : memref<32x32xf32, #tpu.memory_space<vmem>>, vector<32x32xf32>
      %cst_22 = arith.constant dense<0.000000e+00> : vector<4x32xf32>
      %23 = tpu.matmul %21, %22, %cst_22 {dimension_numbers = #tpu.dot_dimension_numbers<[1], [0], [0], [1], [0, 0, 1, 1], [], []>} : vector<4x32xf32>, vector<32x32xf32>, vector<4x32xf32> -> vector<4x32xf32>
      %c0_23 = arith.constant 0 : index
      %c0_24 = arith.constant 0 : index
      %24 = vector.load %arg7[%c0_23, %c0_24] : memref<1x32xf32, #tpu.memory_space<vmem>>, vector<1x32xf32>
      %25 = vector.broadcast %24 : vector<1x32xf32> to vector<4x32xf32>
      %26 = arith.addf %23, %25 : vector<4x32xf32>
      %c0_25 = arith.constant 0 : index
      %c0_26 = arith.constant 0 : index
      %27 = vector.load %arg8[%c0_25, %c0_26] : memref<32x128xf32, #tpu.memory_space<vmem>>, vector<32x128xf32>
      %cst_27 = arith.constant dense<0.000000e+00> : vector<4x128xf32>
      %28 = tpu.matmul %26, %27, %cst_27 {dimension_numbers = #tpu.dot_dimension_numbers<[1], [0], [0], [1], [0, 0, 1, 1], [], []>} : vector<4x32xf32>, vector<32x128xf32>, vector<4x128xf32> -> vector<4x128xf32>
      %c0_28 = arith.constant 0 : index
      %c0_29 = arith.constant 0 : index
      %29 = vector.load %arg9[%c0_28, %c0_29] : memref<1x128xf32, #tpu.memory_space<vmem>>, vector<1x128xf32>
      %30 = vector.broadcast %29 : vector<1x128xf32> to vector<4x128xf32>
      %31 = arith.addf %28, %30 : vector<4x128xf32>
      %c0_30 = arith.constant 0 : index
      %c0_31 = arith.constant 0 : index
      %32 = vector.load %arg10[%c0_30, %c0_31] : memref<4x128xf32, #tpu.memory_space<vmem>>, vector<4x128xf32>
      tpu.vector_store %arg10[%c0_30, %c0_31], %31 {strides = array<i32>} : memref<4x128xf32, #tpu.memory_space<vmem>>, vector<4x128xf32>,
    } else {
    }
    return
  }
  func.func @transform_0(%arg0: i32) -> (i32, i32) {
    %c0_i32 = arith.constant 0 : i32
    %c0_i32_0 = arith.constant 0 : i32
    return %arg0, %c0_i32 : i32, i32
  }
  func.func @transform_1(%arg0: i32) -> (i32, i32) {
    %c0_i32 = arith.constant 0 : i32
    %c0_i32_0 = arith.constant 0 : i32
    %c0_i32_1 = arith.constant 0 : i32
    return %c0_i32, %c0_i32_0 : i32, i32
  }
  func.func @transform_2(%arg0: i32) -> (i32, i32) {
    %c0_i32 = arith.constant 0 : i32
    %c0_i32_0 = arith.constant 0 : i32
    %c0_i32_1 = arith.constant 0 : i32
    return %c0_i32, %c0_i32_0 : i32, i32
  }
  func.func @transform_3(%arg0: i32) -> (i32, i32) {
    %c0_i32 = arith.constant 0 : i32
    %c0_i32_0 = arith.constant 0 : i32
    %c0_i32_1 = arith.constant 0 : i32
    return %c0_i32, %c0_i32_0 : i32, i32
  }
  func.func @transform_4(%arg0: i32) -> (i32, i32) {
    %c0_i32 = arith.constant 0 : i32
    %c0_i32_0 = arith.constant 0 : i32
    return %c0_i32, %arg0 : i32, i32
  }
  func.func @transform_5(%arg0: i32) -> (i32, i32) {
    %c0_i32 = arith.constant 0 : i32
    %c0_i32_0 = arith.constant 0 : i32
    %c0_i32_1 = arith.constant 0 : i32
    return %c0_i32, %c0_i32_0 : i32, i32
  }
  func.func @transform_6(%arg0: i32) -> (i32, i32) {
    %c0_i32 = arith.constant 0 : i32
    %c0_i32_0 = arith.constant 0 : i32
    %c0_i32_1 = arith.constant 0 : i32
    return %c0_i32, %c0_i32_0 : i32, i32
  }
  func.func @transform_7(%arg0: i32) -> (i32, i32) {
    %c0_i32 = arith.constant 0 : i32
    %c0_i32_0 = arith.constant 0 : i32
    %c0_i32_1 = arith.constant 0 : i32
    return %c0_i32, %c0_i32_0 : i32, i32
  }
  func.func @transform_8(%arg0: i32) -> (i32, i32) {
    %c0_i32 = arith.constant 0 : i32
    %c0_i32_0 = arith.constant 0 : i32
    %c0_i32_1 = arith.constant 0 : i32
    return %c0_i32, %c0_i32_0 : i32, i32
  }
  func.func @transform_9(%arg0: i32) -> (i32, i32) {
    %c0_i32 = arith.constant 0 : i32
    %c0_i32_0 = arith.constant 0 : i32
    %c0_i32_1 = arith.constant 0 : i32
    return %c0_i32, %c0_i32_0 : i32, i32
  }
}

</mosaic_0001>

<bundles_post_ra>
// kernel: tpu_custom_call.1
= control target key start
LH: loop header
LB: loop body
LE: loop exit
PB: predicated region body
PF: predicated region fallthrough
CT: control target
= control target key end

     0   :  { %14 = vsyncpa [#allocation4], 0  ;;  %s2080_s0 = inlined_call_operand.hbm [shape: bf16[256,256], index: 0, kind: input, shape index: {}]   ;;  %s2081_s1 = inlined_call_operand.vmem [shape: bf16[256,16], index: 1, kind: input, shape index: {}]   ;;  %s2082_s2 = inlined_call_operand.vmem [shape: f32[16,32], index: 2, kind: input, shape index: {}]   ;;  %s2083_s3 = inlined_call_operand.vmem [shape: f32[1,32], index: 3, kind: input, shape index: {}]   ;;  %s2084_s4 = inlined_call_operand.vmem [shape: f32[4,256], index: 4, kind: input, shape index: {}]   ;;  %s2085_s5 = inlined_call_operand.vmem [shape: f32[32,32], index: 5, kind: input, shape index: {}]   ;;  %s2086_s6 = inlined_call_operand.vmem [shape: f32[1,32], index: 6, kind: input, shape index: {}]   ;;  %s2087_s7 = inlined_call_operand.vmem [shape: f32[32,128], index: 7, kind: input, shape index: {}]   ;;  %s2088_s8 = inlined_call_operand.vmem [shape: f32[1,128], index: 8, kind: input, shape index: {}]   ;;  %s2089_s9 = inlined_call_operand.hbm [shape: f32[4,128], index: 9, kind: output, shape index: {}]  }
   0x1   :  { %16 = vsyncpa [#allocation4 + $0x1], 0 }
   0x2   :  { %17 = vsyncpa [#allocation5], 0  ;;  %s1797_s30 = smov 0   ;;  %s1799_s10 = smov 0  }
   0x3   :  { %s1801_s11 = smov 0   ;;  %s1803_s12 = smov 0  }
   0x4 LB: > { %s1816_s13 = sadd.s32 4294967295, %s1734_s12   ;;  %s1819_s14 = sadd.s32 1, %s1734_s12   ;;  %s1734_s12 = sphi %s1803_s12, %s2096_s12   ;;  %s1730_s11 = sphi %s1801_s11, %s2095_s11   ;;  %s1726_s10 = sphi %s1799_s10, %s2094_s10   ;;  %s1722_s30 = sphi %s1797_s30, %s2093_s30  }
   0x5   : > { %s27_s15 = ssub.s32 %s1734_s12, %s1819_s14  ;;  %s30_s16 = sadd.s32 1, %s1730_s11 }
   0x6   : > { %p28_p0 = scmp.eq.s32.totalorder %s27_s15, 0  ;;  %p37_p1 = scmp.ne.s32.totalorder %s1730_s11, %s1726_s10 }
   0x7   : > { %p38_p2 = scmp.eq.s32.totalorder %s1734_s12, 0  ;;  %p43_p3 = scmp.ne.s32.totalorder %s1726_s10, %s1722_s30 }
   0x8   : > { %s1829_s17 = scalar_select %p28_p0, %s1730_s11, %s30_s16  }
   0x9   : > { %p39_p4 = por %p38_p2, %p37_p1  ;;  %p44_p5 = scmp.eq.s32.totalorder %s1816_s13, 0 }
   0xa   : > { %p1555_p6 = scmp.lt.s32.totalorder %s1734_s12, 2  ;;  %s282_s19 = sand.u32 1, %s1730_s11  }
   0xb   : > { %p1833_p7 = por %p44_p5, %p43_p3  ;;  %s1227_s20 = sshll.u32 %s282_s19, 7 }
   0xc   : > { %s1294_s21 = sshll.u32 %s1734_s12, 11  ;;  %s286_s25 = scalar_lea.vmem [#allocation3], %s1227_s20 }
   0xd   : > { %s1842_s24 = scalar_lea.hbm %s2080_s0, %s1294_s21  ;;  %s294_s26 = sshll.u32 %s286_s25, 4  ;;  %s1844_s26 = int_to_ptr.vmem [resolvable:$true] %s294_s26 }
   0xe   : > { %p1846_p8 = pnand %p1555_p6, %p39_p4  ;;  %s1851_s28 = scalar_lea.sflag [#allocation4], %s282_s19 }
   0xf   : > { %s1640_s29 = scalar_lea.hbm %s1842_s24, 2048  ;;  %s1645_s16 = scalar_lea.hbm %s2080_s0, 4096 }
  0x10   : > { %p1641_p10 = scmp.ne.s32.totalorder %s1842_s24, %s1640_s29  ;;  %p1642_p11 = pneg %p1846_p8 }
  0x11   : > { %p1646_p0 = scmp.lt.u32.totalorder %s1842_s24, %s2080_s0  ;;  %p1647_p1 = scmp.lt.u32.totalorder %s1645_s16, %s1640_s29 }
  0x12   : > { %p1643_p12 = pnand %p1642_p11, %p1641_p10  ;;  %p1649_p3 = scmp.lt.u32.totalorder %s1640_s29, %s1842_s24 }
  0x13   : > { %p1648_p2 = por %p1647_p1, %p1646_p0 }
  0x14   : > { %p1644_p13 = pneg %p1643_p12 }
  0x15   : > { %p1650_p4 = por %p1649_p3, %p1648_p2 }
  0x17   : > { %p1651_p5 = pnand %p1650_p4, %p1644_p13 }
  0x19   : > { %1654 = shalt.err (!%p1651_p5)
}
  0x1a   : > { %s1655_s19 = scalar_lea.vmem %s1844_s26, 2048  ;;  %s1736_s22 = smov [#allocation3]  }
  0x1b   : > { %p1656_p6 = scmp.ne.s32.totalorder %s1844_s26, %s1655_s19  ;;  %s1660_s23 = sshll.u32 %s1736_s22, 4  ;;  %s1661_s23 = int_to_ptr.vmem [resolvable:$false] %s1660_s23 }
  0x1c   : > { %s1662_s25 = scalar_lea.vmem %s1661_s23, 4096  ;;  %p1663_p9 = scmp.lt.s32.totalorder %s1844_s26, %s1661_s23 }
  0x1d   : > { %p1658_p10 = pnand %p1656_p6, %p1642_p11  ;;  %p1664_p0 = scmp.lt.s32.totalorder %s1662_s25, %s1655_s19 }
  0x1f   : > { %p1659_p12 = pneg %p1658_p10  ;;  %p1665_p1 = por %p1664_p0, %p1663_p9 }
  0x21   : > { %p1666_p2 = pnand %p1665_p1, %p1659_p12 }
  0x23   : > { %1669 = shalt.err (!%p1666_p2)
}
  0x24   : > { %s1737_s29 = smov 128   ;;  %s1738_s30 = smov 8  }
  0x25   : > { %1554 = dma.hbm_to_vmem [thread:$0]  (!%p1846_p8), %s1842_s24, 2048, %s1844_s26, %s1851_s28, %s1737_s29, %s1737_s29, %s1738_s30  }
  0x26   : > { %p309_p11 = scmp.lt.s32.totalorder %s1734_s12, 3  ;;  %p2092_p13 = scmp.ge.s32.totalorder %s1734_s12, 1 }
  0x28   : > { %p310_p3 = pnand %p2092_p13, %p309_p11 }
  0x29   : > { %s315_s15 = sand.u32 (!%p310_p3), 1, %s1726_s10  }
  0x2a   : > { %313 = sbr.rel (%p310_p3) target bundleno = 1260 (0x4ec), region = 56  ;;  %s1232_s16 = sshll.u32 (!%p310_p3), %s315_s15, 7 }
  0x2b   : > { %s316_s20 = scalar_lea.sflag (!%p310_p3), [#allocation4], %s315_s15  ;;  %s1883_s21 = scalar_lea.vmem (!%p310_p3), [#allocation3], %s1232_s16 }
  0x31   : > { %1713 = dma.done.wait (%p1833_p7), %s316_s20, 2048  }
  0x32   : > { %1715 = vsyncadd (%p1833_p7), %s316_s20, 4294965248  ;;  %p354_p9 = scmp.lt.s32.totalorder %s1816_s13, 1  ;;  %p1234_p8 = scmp.ne.s32.totalorder %s1816_s13, 0 }
  0x33   : > { %vm363_vm0 = vcmask (!%p1234_p8), 257024   ;;  %v1739_v0 = vmov (!%p1234_p8), 0.0  }
  0x34   : > { %s355_s24 = scalar_select %p354_p9, %s1816_s13, 1 }
  0x35   : > { %362 = sbr.rel (%p1234_p8) target bundleno = 60 (0x3c), region = 64  ;;  %364 = vst.msk [vmem:[#allocation2] sm:$0xf] (!%p1234_p8), %vm363_vm0, %v1739_v0 }
  0x36   : > { %s1233_s26 = sshll.u32 %s355_s24, 2 }
  0x37   : > { %s1894_s28 = scalar_lea.vmem %s2084_s4, %s1233_s26 }
  0x3c PF: > { %v1600_v1 = vld [vmem:[%s2081_s1 + $0x40] sm:$0xff]   ;;  %v1602_v3 = vld [vmem:[%s2081_s1 + $0x48] sm:$0xff]   ;;  %v1604_v5 = vld [vmem:[%s2081_s1 + $0x50] sm:$0xff]   ;;  %vm695_vm1 = vcmask 130048   ;;  %vm1741_vm2 = vmmov 0   ;;  %vm978_vm3 = vcmask 257024  }
  0x3d   : > { %v1601_v2 = vld [vmem:[%s2081_s1] sm:$0xff]   ;;  %1295 = vmatprep.subr.bf16.mxu0 %v1600_v1  ;;  %1529 = vmatprep.subr.bf16.mxu1 %v1600_v1  ;;  %v1603_v4 = vld [vmem:[%s2081_s1 + $0x8] sm:$0xff]   ;;  %v1605_v6 = vld [vmem:[%s2081_s1 + $0x10] sm:$0xff]   ;;  %p1284_p7 = scmp.ne.s32.totalorder %s1816_s13, 1 }
  0x3e   : > { %1296 = vmatpush3.bf16.msra.mxu0 %v1601_v2  ;;  %1537 = vmatpush3.bf16.msra.mxu1 %v1601_v2  ;;  %v1606_v7 = vld [vmem:[%s2081_s1 + $0x58] sm:$0xff]   ;;  %v1608_v9 = vld [vmem:[%s2081_s1 + $0x60] sm:$0xff]   ;;  %v1610_v11 = vld [vmem:[%s2081_s1 + $0x68] sm:$0xff]   ;;  %vm1744_vm4 = vmmov (!%p1284_p7), 0   ;;  %vm996_vm5 = vcmask (!%p1284_p7), 261120  }
  0x3f   : > { %1297 = vmatprep.subr.bf16.mxu0 %v1602_v3  ;;  %1530 = vmatprep.subr.bf16.mxu1 %v1602_v3  ;;  %v1607_v8 = vld [vmem:[%s2081_s1 + $0x18] sm:$0xff]   ;;  %v1609_v10 = vld [vmem:[%s2081_s1 + $0x20] sm:$0xff]   ;;  %v1618_v12 = vld [vmem:[%s1883_s21 + $0x4] ss:$8 sps:$4 sm:$0xff]  }
  0x40   : > { %v1611_v13 = vld [vmem:[%s2081_s1 + $0x28] sm:$0xff]   ;;  %621 = vmatprep.mubr.bf16.mxu0 %v1618_v12  ;;  %v1612_v14 = vld [vmem:[%s2081_s1 + $0x70] sm:$0xff]   ;;  %v1614_v16 = vld [vmem:[%s2081_s1 + $0x78] sm:$0xff]  }
  0x41   : > { %v1613_v15 = vld [vmem:[%s2081_s1 + $0x30] sm:$0xff]   ;;  %v1639_v17 = vld [vmem:[%s1883_s21 + $0x74] ss:$8 sps:$4 sm:$0xff]   ;;  %v1616_v19 = vld [vmem:[%s1883_s21] ss:$8 sps:$4 sm:$0xff]  }
  0x42   : > { %1298 = vmatpush3.bf16.msra.mxu0 %v1603_v4  ;;  %1538 = vmatpush3.bf16.msra.mxu1 %v1603_v4  ;;  %v1615_v18 = vld [vmem:[%s2081_s1 + $0x38] sm:$0xff]   ;;  %v1622_v23 = vld [vmem:[%s1883_s21 + $0x24] ss:$8 sps:$4 sm:$0xff]   ;;  %v1624_v24 = vld [vmem:[%s1883_s21 + $0x20] ss:$8 sps:$4 sm:$0xff]  }
  0x43   : > { %1299 = vmatprep.subr.bf16.mxu0 %v1604_v5  ;;  %1531 = vmatprep.subr.bf16.mxu1 %v1604_v5  ;;  %v1619_v20 = vld [vmem:[%s1883_s21 + $0x14] ss:$8 sps:$4 sm:$0xff]   ;;  %v1637_v21 = vld [vmem:[%s1883_s21 + $0x70] ss:$8 sps:$4 sm:$0xff]   ;;  %v1628_v27 = vld [vmem:[%s1883_s21 + $0x44] ss:$8 sps:$4 sm:$0xff]  }
  0x44   : > { %677 = vmatprep.mubr.bf16.mxu1 %v1639_v17  ;;  %v1621_v22 = vld [vmem:[%s1883_s21 + $0x10] ss:$8 sps:$4 sm:$0xff]   ;;  %v1625_v25 = vld [vmem:[%s1883_s21 + $0x34] ss:$8 sps:$4 sm:$0xff]   ;;  %v1630_v28 = vld [vmem:[%s1883_s21 + $0x40] ss:$8 sps:$4 sm:$0xff]  }
  0x45   : > { %v1627_v26 = vld [vmem:[%s1883_s21 + $0x30] ss:$8 sps:$4 sm:$0xff]   ;;  %v1631_v29 = vld [vmem:[%s1883_s21 + $0x54] ss:$8 sps:$4 sm:$0xff]   ;;  %v1634_v31 = vld [vmem:[%s1883_s21 + $0x64] ss:$8 sps:$4 sm:$0xff]  }
  0x46   : > { %1300 = vmatpush3.bf16.msra.mxu0 %v1605_v6  ;;  %1539 = vmatpush3.bf16.msra.mxu1 %v1605_v6  ;;  %v1633_v30 = vld [vmem:[%s1883_s21 + $0x50] ss:$8 sps:$4 sm:$0xff]   ;;  %v1636_v32 = vld [vmem:[%s1883_s21 + $0x60] ss:$8 sps:$4 sm:$0xff]  }
  0x47   : > { %1301 = vmatprep.subr.bf16.mxu0 %v1606_v7  ;;  %1532 = vmatprep.subr.bf16.mxu1 %v1606_v7  ;;  %v686_v33 = vld [vmem:[%s2082_s2] sm:$0xff]  ;;  %v687_v34 = vld [vmem:[%s2082_s2 + $0x8] sm:$0xff] }
  0x48   : > { %v1489_v35 = vpack.c.bf16 %v687_v34, %v686_v33 }
  0x4a   : > { %1302 = vmatpush3.bf16.msra.mxu0 %v1607_v8  ;;  %1540 = vmatpush3.bf16.msra.mxu1 %v1607_v8 }
  0x4b   : > { %1303 = vmatprep.subr.bf16.mxu0 %v1608_v9  ;;  %1533 = vmatprep.subr.bf16.mxu1 %v1608_v9 }
  0x4e   : > { %1304 = vmatpush3.bf16.msra.mxu0 %v1609_v10  ;;  %1541 = vmatpush3.bf16.msra.mxu1 %v1609_v10 }
  0x4f   : > { %1305 = vmatprep.subr.bf16.mxu0 %v1610_v11  ;;  %1534 = vmatprep.subr.bf16.mxu1 %v1610_v11 }
  0x52   : > { %1306 = vmatpush3.bf16.msra.mxu0 %v1611_v13  ;;  %1542 = vmatpush3.bf16.msra.mxu1 %v1611_v13 }
  0x53   : > { %1307 = vmatprep.subr.bf16.mxu0 %v1612_v14  ;;  %1535 = vmatprep.subr.bf16.mxu1 %v1612_v14 }
  0x56   : > { %1308 = vmatpush3.bf16.msra.mxu0 %v1613_v15  ;;  %1543 = vmatpush3.bf16.msra.mxu1 %v1613_v15 }
  0x57   : > { %1309 = vmatprep.subr.bf16.mxu0 %v1614_v16  ;;  %1536 = vmatprep.subr.bf16.mxu1 %v1614_v16 }
  0x5a   : > { %1310 = vmatpush3.bf16.msra.mxu0 %v1615_v18  ;;  %1544 = vmatpush3.bf16.msra.mxu1 %v1615_v18 }
  0x5b   : > { %1490 = vmatprep.subr.bf16.mxu1 %v1489_v35 }
  0x5d   : > { %622 = vmatmul.mubr.bf16.vlgmr.msra.gmra.mrb[0].mxu0 %v1616_v19  ;;  %678 = vmatmul.mubr.bf16.vlgmr.msra.gmra.mrb[0].mxu1 %v1637_v21  ;;  %v1742_v21 = vmov 0.0  }
  0x5e   : > { %629 = vmatprep.mubr.bf16.mxu0 %v1619_v20  ;;  %1492 = vmatpush3.bf16.msra.mxu1 %v1489_v35  ;;  %v1740_v20 = vmov 0.0|0.0  }
  0x5f   : > { %1493 = vmatprep.subr.bf16.mxu1 %v1740_v20 }
  0x65   : > { %630 = vmatmul.mubr.bf16.gmra.mrb[4].mxu0 %v1621_v22  ;;  %v1987_v22 = vld [vmem:[%s2083_s3] ss:$0 sm:$0xff] }
  0x66   : > { %637 = vmatprep.mubr.bf16.mxu0 %v1622_v23 }
  0x6d   : > { %638 = vmatmul.mubr.bf16.gmra.mrb[8].mxu0 %v1624_v24 }
  0x6e   : > { %645 = vmatprep.mubr.bf16.mxu0 %v1625_v25 }
  0x75   : > { %646 = vmatmul.mubr.bf16.gmra.mrb[12].mxu0 %v1627_v26 }
  0x76   : > { %653 = vmatprep.mubr.bf16.mxu0 %v1628_v27 }
  0x7d   : > { %654 = vmatmul.mubr.bf16.gmra.mrb[16].mxu0 %v1630_v28 }
  0x7e   : > { %661 = vmatprep.mubr.bf16.mxu0 %v1631_v29 }
  0x85   : > { %662 = vmatmul.mubr.bf16.gmra.mrb[20].mxu0 %v1633_v30 }
  0x86   : > { %669 = vmatprep.mubr.bf16.mxu0 %v1634_v31 }
  0x8d   : > { %670 = vmatmul.mubr.bf16.gmra.mrb[24].mxu0 %v1636_v32 }
 0x130   : > { %v1311_v36 = vpop.f32.mrb[0].mxu0  ;;  %v1353_v38 = vpop.f32.mrb[0].mxu1 }
 0x131   : > { %v1312_v37 = vpop.f32.mrb[1].mxu0  ;;  %v1354_v41 = vpop.f32.mrb[1].mxu1 }
 0x132   : > { %v1313_v39 = vadd.f32 %v1312_v37, %v1311_v36  ;;  %v1314_v40 = vpop.f32.mrb[2].mxu0  ;;  %v1355_v43 = vadd.f32 %v1354_v41, %v1353_v38  ;;  %v1356_v44 = vpop.f32.mrb[2].mxu1 }
 0x133   : > { %v1315_v42 = vpop.f32.mrb[3].mxu0  ;;  %v1357_v46 = vpop.f32.mrb[3].mxu1 }
 0x134   : > { %v1316_v45 = vadd.f32 %v1315_v42, %v1314_v40  ;;  %1408 = vmatprep.mubr.msk.f32.mxu1 %vm695_vm1, %v1313_v39  ;;  %v1358_v47 = vadd.f32 %v1357_v46, %v1356_v44 }
 0x136   : > { %1409 = vmatmul.mubr.msk.f32.vlgmr.msra.gmra.mrb[4].mxu1 %vm695_vm1, %v1316_v45 }
 0x138   : > { %v1317_v48 = vpop.f32.mrb[4].mxu0 }
 0x139   : > { %v1318_v49 = vpop.f32.mrb[5].mxu0 }
 0x13a   : > { %v1319_v50 = vadd.f32 %v1318_v49, %v1317_v48  ;;  %v1320_v51 = vpop.f32.mrb[6].mxu0 }
 0x13b   : > { %v1321_v52 = vpop.f32.mrb[7].mxu0 }
 0x13c   : > { %v1322_v53 = vadd.f32 %v1321_v52, %v1320_v51  ;;  %1411 = vmatprep.mubr.msk.f32.mxu1 %vm695_vm1, %v1319_v50 }
 0x13e   : > { %1412 = vmatmul.mubr.msk.f32.gmra.mrb[6].mxu1 %vm695_vm1, %v1322_v53 }
 0x140   : > { %v1323_v54 = vpop.f32.mrb[8].mxu0 }
 0x141   : > { %v1324_v55 = vpop.f32.mrb[9].mxu0 }
 0x142   : > { %v1325_v56 = vadd.f32 %v1324_v55, %v1323_v54  ;;  %v1326_v57 = vpop.f32.mrb[10].mxu0 }
 0x143   : > { %v1327_v58 = vpop.f32.mrb[11].mxu0 }
 0x144   : > { %v1328_v59 = vadd.f32 %v1327_v58, %v1326_v57  ;;  %1414 = vmatprep.mubr.msk.f32.mxu1 %vm695_vm1, %v1325_v56 }
 0x146   : > { %1415 = vmatmul.mubr.msk.f32.gmra.mrb[8].mxu1 %vm695_vm1, %v1328_v59 }
 0x148   : > { %v1329_v60 = vpop.f32.mrb[12].mxu0 }
 0x149   : > { %v1330_v61 = vpop.f32.mrb[13].mxu0 }
 0x14a   : > { %v1331_v62 = vadd.f32 %v1330_v61, %v1329_v60  ;;  %v1332_v63 = vpop.f32.mrb[14].mxu0 }
 0x14b   : > { %v1333_v0 = vpop.f32.mrb[15].mxu0 }
 0x14c   : > { %v1334_v1 = vadd.f32 %v1333_v0, %v1332_v63  ;;  %1417 = vmatprep.mubr.msk.f32.mxu1 %vm695_vm1, %v1331_v62 }
 0x14e   : > { %1418 = vmatmul.mubr.msk.f32.gmra.mrb[10].mxu1 %vm695_vm1, %v1334_v1 }
 0x150   : > { %v1335_v2 = vpop.f32.mrb[16].mxu0 }
 0x151   : > { %v1336_v3 = vpop.f32.mrb[17].mxu0 }
 0x152   : > { %v1337_v4 = vadd.f32 %v1336_v3, %v1335_v2  ;;  %v1338_v5 = vpop.f32.mrb[18].mxu0 }
 0x153   : > { %v1339_v6 = vpop.f32.mrb[19].mxu0 }
 0x154   : > { %v1340_v7 = vadd.f32 %v1339_v6, %v1338_v5  ;;  %1420 = vmatprep.mubr.msk.f32.mxu1 %vm695_vm1, %v1337_v4 }
 0x156   : > { %1421 = vmatmul.mubr.msk.f32.gmra.mrb[12].mxu1 %vm695_vm1, %v1340_v7 }
 0x158   : > { %v1341_v8 = vpop.f32.mrb[20].mxu0 }
 0x159   : > { %v1342_v9 = vpop.f32.mrb[21].mxu0 }
 0x15a   : > { %v1343_v10 = vadd.f32 %v1342_v9, %v1341_v8  ;;  %v1344_v11 = vpop.f32.mrb[22].mxu0 }
 0x15b   : > { %v1345_v12 = vpop.f32.mrb[23].mxu0 }
 0x15c   : > { %v1346_v13 = vadd.f32 %v1345_v12, %v1344_v11  ;;  %1423 = vmatprep.mubr.msk.f32.mxu1 %vm695_vm1, %v1343_v10 }
 0x15e   : > { %1424 = vmatmul.mubr.msk.f32.gmra.mrb[14].mxu1 %vm695_vm1, %v1346_v13 }
 0x160   : > { %v1347_v14 = vpop.f32.mrb[24].mxu0 }
 0x161   : > { %v1348_v15 = vpop.f32.mrb[25].mxu0 }
 0x162   : > { %v1349_v16 = vadd.f32 %v1348_v15, %v1347_v14  ;;  %v1350_v17 = vpop.f32.mrb[26].mxu0  ;;  %v906_v15 = vld [vmem:[%s1894_s28] sm:$0xf] }
 0x163   : > { %v1351_v18 = vpop.f32.mrb[27].mxu0 }
 0x164   : > { %v1352_v19 = vadd.f32 %v1351_v18, %v1350_v17  ;;  %1426 = vmatprep.mubr.msk.f32.mxu1 %vm695_vm1, %v1349_v16  ;;  %v905_v16 = vld [vmem:[#allocation2] sm:$0xf] }
 0x166   : > { %1427 = vmatmul.mubr.msk.f32.gmra.mrb[16].mxu1 %vm695_vm1, %v1352_v19 }
 0x167   : > { %1429 = vmatprep.mubr.msk.f32.mxu1 %vm695_vm1, %v1355_v43 }
 0x16a   : > { %1430 = vmatmul.mubr.msk.f32.gmra.mrb[18].mxu1 %vm695_vm1, %v1358_v47 }
 0x16b   : > { %1464 = vmatprep.mubr.msk.f32.mxu1 %vm1741_vm2, %v1742_v21  ;;  %v985_v21 = vld [vmem:[%s2085_s5] sm:$0xff] (!%p1284_p7) }
 0x209   : > { %v1410_v23 = vpop.f32.mrb[4].mxu1 }
 0x20a   : > { %v816_v24 = vadd.f32 %v1410_v23, %v1987_v22  ;;  %v810_v25 = vpop.f32.mrb[5].mxu1  ;;  %v1743_v23 = vmov (!%p1284_p7), 0.0|0.0  }
 0x20b   : > { %v811_v26 = vadd.f32 %v1987_v22, %v810_v25  ;;  %1517 = vmatprep.subr.bf16.mxu0 (!%p1284_p7), %v1743_v23  ;;  %v988_v25 = vld [vmem:[%s2085_s5 + $0x18] sm:$0xff] (!%p1284_p7) }
 0x20c   : > { %v890_v27 = vmax.f32 %v816_v24, 0.0 }
 0x20d   : > { %v889_v28 = vmax.f32 %v811_v26, 0.0  ;;  %v1745_v26 = vmov (!%p1284_p7), 0.0  }
 0x20e   : > { %1475 = vmatprep.mubr.msk.f32.mxu0 (!%p1284_p7), %vm1744_vm4, %v1745_v26 }
 0x20f   : > { %v1494_v29 = vpack.c.bf16 %v890_v27, %v889_v28  ;;  %v1070_v27 = vld [vmem:[%s2087_s7] sm:$0xff] (!%p1284_p7)  ;;  %v1071_v28 = vld [vmem:[%s2087_s7 + $0x8] sm:$0xff] (!%p1284_p7) }
 0x211   : > { %v1413_v30 = vpop.f32.mrb[6].mxu1  ;;  %1495 = vmatpush3.bf16.msra.mxu1 %v1494_v29 }
 0x212   : > { %v826_v31 = vadd.f32 %v1413_v30, %v1987_v22  ;;  %v820_v32 = vpop.f32.mrb[7].mxu1  ;;  %1496 = vmatprep.subr.bf16.mxu1 %v1740_v20  ;;  %v1524_v30 = vpack.c.bf16 (!%p1284_p7), %v1071_v28, %v1070_v27 }
 0x213   : > { %v821_v33 = vadd.f32 %v1987_v22, %v820_v32  ;;  %v1072_v32 = vld [vmem:[%s2087_s7 + $0x10] sm:$0xff] (!%p1284_p7) }
 0x214   : > { %v892_v34 = vmax.f32 %v826_v31, 0.0 }
 0x215   : > { %v891_v35 = vmax.f32 %v821_v33, 0.0  ;;  %v1073_v33 = vld [vmem:[%s2087_s7 + $0x18] sm:$0xff] (!%p1284_p7) }
 0x217   : > { %v1497_v36 = vpack.c.bf16 %v892_v34, %v891_v35  ;;  %v1527_v34 = vpack.c.bf16 (!%p1284_p7), %v1073_v33, %v1072_v32  ;;  %v1285_v35 = vld [vmem:[%s2086_s6] ss:$0 sm:$0xff] (!%p1284_p7) }
 0x219   : > { %v1416_v37 = vpop.f32.mrb[8].mxu1  ;;  %1498 = vmatpush3.bf16.msra.mxu1 %v1497_v36 }
 0x21a   : > { %v836_v38 = vadd.f32 %v1416_v37, %v1987_v22  ;;  %v830_v39 = vpop.f32.mrb[9].mxu1  ;;  %1499 = vmatprep.subr.bf16.mxu1 %v1740_v20 }
 0x21b   : > { %v831_v40 = vadd.f32 %v1987_v22, %v830_v39  ;;  %v1287_v39 = vld [vmem:[%s2088_s8] ss:$0 sm:$0xff] (!%p1284_p7) }
 0x21c   : > { %v894_v41 = vmax.f32 %v836_v38, 0.0 }
 0x21d   : > { %v893_v42 = vmax.f32 %v831_v40, 0.0 }
 0x21f   : > { %v1500_v43 = vpack.c.bf16 %v894_v41, %v893_v42 }
 0x221   : > { %v1419_v44 = vpop.f32.mrb[10].mxu1  ;;  %1501 = vmatpush3.bf16.msra.mxu1 %v1500_v43 }
 0x222   : > { %v846_v45 = vadd.f32 %v1419_v44, %v1987_v22  ;;  %v840_v46 = vpop.f32.mrb[11].mxu1  ;;  %1502 = vmatprep.subr.bf16.mxu1 %v1740_v20 }
 0x223   : > { %v841_v47 = vadd.f32 %v1987_v22, %v840_v46 }
 0x224   : > { %v896_v48 = vmax.f32 %v846_v45, 0.0 }
 0x225   : > { %v895_v49 = vmax.f32 %v841_v47, 0.0 }
 0x227   : > { %v1503_v50 = vpack.c.bf16 %v896_v48, %v895_v49 }
 0x229   : > { %v1422_v51 = vpop.f32.mrb[12].mxu1  ;;  %1504 = vmatpush3.bf16.msra.mxu1 %v1503_v50 }
 0x22a   : > { %v856_v52 = vadd.f32 %v1422_v51, %v1987_v22  ;;  %v850_v53 = vpop.f32.mrb[13].mxu1  ;;  %1505 = vmatprep.subr.bf16.mxu1 %v1740_v20 }
 0x22b   : > { %v851_v54 = vadd.f32 %v1987_v22, %v850_v53 }
 0x22c   : > { %v898_v55 = vmax.f32 %v856_v52, 0.0 }
 0x22d   : > { %v897_v56 = vmax.f32 %v851_v54, 0.0 }
 0x22f   : > { %v1506_v57 = vpack.c.bf16 %v898_v55, %v897_v56 }
 0x231   : > { %v1425_v58 = vpop.f32.mrb[14].mxu1  ;;  %1507 = vmatpush3.bf16.msra.mxu1 %v1506_v57 }
 0x232   : > { %v866_v59 = vadd.f32 %v1425_v58, %v1987_v22  ;;  %v860_v60 = vpop.f32.mrb[15].mxu1  ;;  %1508 = vmatprep.subr.bf16.mxu1 %v1740_v20 }
 0x233   : > { %v861_v61 = vadd.f32 %v1987_v22, %v860_v60 }
 0x234   : > { %v900_v62 = vmax.f32 %v866_v59, 0.0 }
 0x235   : > { %v899_v63 = vmax.f32 %v861_v61, 0.0 }
 0x237   : > { %v1509_v0 = vpack.c.bf16 %v900_v62, %v899_v63 }
 0x239   : > { %v1428_v1 = vpop.f32.mrb[16].mxu1  ;;  %1510 = vmatpush3.bf16.msra.mxu1 %v1509_v0 }
 0x23a   : > { %v876_v2 = vadd.f32 %v1428_v1, %v1987_v22  ;;  %v870_v3 = vpop.f32.mrb[17].mxu1  ;;  %1511 = vmatprep.subr.bf16.mxu1 %v1740_v20 }
 0x23b   : > { %v871_v4 = vadd.f32 %v1987_v22, %v870_v3 }
 0x23c   : > { %v902_v5 = vmax.f32 %v876_v2, 0.0 }
 0x23d   : > { %v901_v6 = vmax.f32 %v871_v4, 0.0  ;;  %v1431_v7 = vpop.f32.mrb[18].mxu1 }
 0x23e   : > { %v886_v8 = vadd.f32 %v1431_v7, %v1987_v22  ;;  %v880_v9 = vpop.f32.mrb[19].mxu1 }
 0x23f   : > { %v1512_v10 = vpack.c.bf16 %v902_v5, %v901_v6  ;;  %v881_v11 = vadd.f32 %v1987_v22, %v880_v9  ;;  %v987_v22 = vld [vmem:[%s2085_s5 + $0x10] sm:$0xff] (!%p1284_p7) }
 0x240   : > { %v904_v12 = vmax.f32 %v886_v8, 0.0  ;;  %v1521_v29 = vpack.c.bf16 (!%p1284_p7), %v988_v25, %v987_v22 }
 0x241   : > { %v903_v13 = vmax.f32 %v881_v11, 0.0  ;;  %1513 = vmatpush3.bf16.msra.mxu1 %v1512_v10 }
 0x242   : > { %1514 = vmatprep.subr.bf16.mxu1 %v1740_v20  ;;  %v986_v20 = vld [vmem:[%s2085_s5 + $0x8] sm:$0xff] (!%p1284_p7) }
 0x243   : > { %v1515_v14 = vpack.c.bf16 %v904_v12, %v903_v13  ;;  %v1518_v24 = vpack.c.bf16 (!%p1284_p7), %v986_v20, %v985_v21 }
 0x245   : > { %1516 = vmatpush3.bf16.msra.mxu1 %v1515_v14  ;;  %1519 = vmatpush3.bf16.msra.mxu0 (!%p1284_p7), %v1518_v24 }
 0x246   : > { %1523 = vmatprep.subr.bf16.mxu1 (!%p1284_p7), %v1743_v23  ;;  %1520 = vmatprep.subr.bf16.mxu0 (!%p1284_p7), %v1743_v23 }
 0x248   : > { %1465 = vmatmul.mubr.f32.vlgmr.msra.gmra.mrb[20].mxu1 %v906_v15 }
 0x249   : > { %1486 = vmatprep.mubr.msk.f32.mxu1 (!%p1284_p7), %vm1744_vm4, %v1745_v26  ;;  %1525 = vmatpush3.bf16.msra.mxu1 (!%p1284_p7), %v1524_v30 }
 0x24a   : > { %1526 = vmatprep.subr.bf16.mxu1 (!%p1284_p7), %v1743_v23  ;;  %1522 = vmatpush3.bf16.msra.mxu0 (!%p1284_p7), %v1521_v29 }
 0x24d   : > { %1528 = vmatpush3.bf16.msra.mxu1 (!%p1284_p7), %v1527_v34 }
 0x318   : > { %983 = sbr.rel (%p1284_p7) target bundleno = 1235 (0x4d3), region = 68 }
 0x31b   : > { %v973_v17 = vpop.f32.mrb[20].mxu1 }
 0x31c   : > { %v977_v18 = vadd.f32 %v973_v17, %v905_v16  ;;  %v1466_v19 = vpop.f32.mrb[21].mxu1 }
 0x31e   : > { %979 = vst.msk [vmem:[#allocation2] sm:$0xf] %vm978_vm3, %v977_v18 }
 0x325   : > { %v984_v31 = vld [vmem:[#allocation2] sm:$0xf] }
 0x326   : > { %1476 = vmatmul.mubr.msk.f32.vlgmr.msra.gmra.mrb[0].mxu0 %vm996_vm5, %v984_v31 }
 0x3f9   : > { %v1066_v36 = vpop.f32.mrb[0].mxu0 }
 0x3fa   : > { %v1067_v37 = vadd.f32 %v1285_v35, %v1066_v36  ;;  %v1477_v38 = vpop.f32.mrb[1].mxu0 }
 0x3fc   : > { %1487 = vmatmul.mubr.msk.f32.vlgmr.msra.gmra.mrb[0].mxu1 %vm996_vm5, %v1067_v37 }
 0x4cf   : > { %v1150_v40 = vpop.f32.mrb[0].mxu1 }
 0x4d0   : > { %v1151_v41 = vadd.f32 %v1287_v39, %v1150_v40  ;;  %v1488_v42 = vpop.f32.mrb[1].mxu1 }
 0x4d2   : > { %1154 = vst [vmem:[#allocation6] sm:$0xf] %v1151_v41 }
 0x4d3 PF: > { %p1556_p4 = scmp.eq.s32.totalorder %s1816_s13, 1  ;;  %s1746_s27 = smov [#allocation6]  }
 0x4d4   : > { %s1162_s28 = sshll.u32 %s1746_s27, 4  ;;  %s1163_s28 = int_to_ptr.vmem [resolvable:$true] %s1162_s28 }
 0x4d5   : > { %s1670_s19 = scalar_lea.vmem %s1163_s28, 64  ;;  %p1677_p12 = scmp.lt.s32.totalorder %s1163_s28, %s1163_s28 }
 0x4d6   : > { %p1671_p5 = scmp.ne.s32.totalorder %s1163_s28, %s1670_s19  ;;  %p1678_p0 = scmp.lt.s32.totalorder %s1670_s19, %s1670_s19 }
 0x4d8   : > { %p1672_p6 = pnand %p1671_p5, %p1556_p4  ;;  %p1679_p1 = por %p1678_p0, %p1677_p12 }
 0x4da   : > { %p1673_p10 = pneg %p1672_p6 }
 0x4dc   : > { %p1680_p2 = pnand %p1679_p1, %p1673_p10 }
 0x4de   : > { %1683 = shalt.err (!%p1680_p2)
}
 0x4df   : > { %s1684_s23 = scalar_lea.hbm %s2089_s9, 64 }
 0x4e0   : > { %p1685_p11 = scmp.ne.s32.totalorder %s2089_s9, %s1684_s23  ;;  %p1690_p9 = scmp.lt.u32.totalorder %s1684_s23, %s2089_s9 }
 0x4e2   : > { %p1686_p13 = pnand %p1685_p11, %p1556_p4 }
 0x4e4   : > { %p1687_p3 = pneg %p1686_p13 }
 0x4e6   : > { %p1692_p8 = pnand %p1690_p9, %p1687_p3 }
 0x4e8   : > { %1695 = shalt.err (!%p1692_p8)
}
 0x4e9   : > { %1548 = dma.vmem_to_hbm [thread:$0]  (%p1556_p4), %s1163_s28, 64, %s2089_s9, [#allocation5]  }
 0x4ea   : > { %1717 = dma.done.wait (%p1556_p4), [#allocation5], 64  }
 0x4eb   : > { %1719 = vsyncadd (%p1556_p4), [#allocation5], 4294967232 }
 0x4ec PF: > { %p20_p7 = scmp.ge.s32.totalorder %s1819_s14, 4   ;;  %s2093_s30 = smov %s1726_s10 }
 0x4ed   : > { %s2094_s10 = smov %s1730_s11  ;;  %s2095_s11 = smov %s1829_s17 }
 0x4ee   : > { %s2096_s12 = smov %s1819_s14  ;;  %22 = sbr.rel (!%p20_p7) target bundleno = 4 (0x4), region = 104 }
 0x4f5   :  { %1175 = vsyncpa [#allocation4], 1 }
 0x4f6   :  { %1177 = vsyncpa [#allocation4 + $0x1], 1 }
 0x4f7   :  { %1178 = vsyncpa [#allocation5], 1 }
 0x4f8   :  { %1180 = vsyncpa [#allocation5 + $0x1], 1 }

</bundles_post_ra>
